<compile_context>
chip_gen: v5e
topology: v5e:2x2
jax: 0.10.0
libtpu: 0.0.40
codegen_flags: <defaults>
</compile_context>

<pallas_src>
import jax
import jax.numpy as jnp
from jax import lax
from jax.experimental import pallas as pl
from jax.experimental.pallas import tpu as pltpu


def _round_up(x, m):
    return ((x + m - 1) // m) * m


def _make_projnetx_kernel(H, W, C, T, KP):
    HW = H * W
    # 128-lane-aligned interior offset; must also be >= W+1 so every tap stays
    # inside the workspace and its halo.
    P = max(_round_up(W + 1, 128), _round_up(W + 1, 128))

    def kernel(x_ref, w1_ref, b1_ref, w2_ref, b2_ref, out_ref, pad_ref, col_ref):
        # x_ref / out_ref : (1, C, HW)             activations, HW on lanes
        # w*_ref          : (T, C, 9*KP)           im2col weights, K-padded to KP
        # b*_ref          : (T, C, 1)
        # pad_ref         : VMEM (C, HW + 2*P) f32 shared padded workspace
        # col_ref         : VMEM (9*KP, HW)  f32   im2col operand buffer

        # Zero halo lanes only (interior is fully overwritten by every conv) and
        # the im2col buffer (its padding rows [k*KP+C, (k+1)*KP) must stay 0).
        pad_ref[:, :P] = jnp.zeros((C, P), jnp.float32)
        pad_ref[:, P + HW:] = jnp.zeros((C, P), jnp.float32)
        col_ref[...] = jnp.zeros_like(col_ref)

        # Column-edge masks: hoisted once per image (loop-invariant over T).
        col = lax.broadcasted_iota(jnp.int32, (C, HW), 1) % W
        ok_left = col >= 1         # tap with ox == -1 is valid
        ok_right = col <= W - 2    # tap with ox == +1 is valid

        def conv3x3(a, w2d, b):
            # a: (C, HW) f32 -> (C, HW) f32, 'same' 3x3 cross-correlation.
            pad_ref[:, P:P + HW] = a            # 128-aligned, unmasked store
            for k in range(9):
                oy, ox = k // 3 - 1, k % 3 - 1
                s = P + oy * W + ox
                src = pad_ref[:, s:s + HW]      # static lane-offset slice
                if ox == -1:
                    src = jnp.where(ok_left, src, 0.0)
                elif ox == 1:
                    src = jnp.where(ok_right, src, 0.0)
                # tile-aligned sublane offset (KP multiple of 8) -> cheap store
                col_ref[k * KP:k * KP + C, :] = src
            # Single MXU dot per conv: (C, 9*KP) x (9*KP, HW).
            return jnp.dot(w2d, col_ref[...],
                           preferred_element_type=jnp.float32) + b

        def block(t, a):
            y1 = jnp.maximum(conv3x3(a, w1_ref[t], b1_ref[t]), 0.0)
            y2 = conv3x3(y1, w2_ref[t], b2_ref[t])
            return a + y2

        x0 = x_ref[0].astype(jnp.float32)
        out_ref[0] = lax.fori_loop(0, T, block, x0).astype(out_ref.dtype)

    return kernel


def _pack_weight(w, C, KP):
    """(9, Cin, Cout) tap-major weights -> (Cout, 9*KP) im2col matrix.

    Column index k*KP + ci holds torch_weight[co, ci, ky, kx] (k = ky*3 + kx);
    columns k*KP+C .. k*KP+KP-1 are zero padding (match the zero rows of the
    in-kernel im2col buffer).
    """
    wt = jnp.transpose(w, (2, 0, 1))                        # (co, k, ci)
    wp = jnp.zeros((C, 9, KP), w.dtype).at[:, :, :C].set(wt)
    return wp.reshape(C, 9 * KP)


def projnetx_forward(x_nchw, params):
    """ProjnetX.forward; x is NCHW at the API boundary (like PyTorch)."""
    N, C, H, W = x_nchw.shape
    T = len(params)
    HW = H * W
    KP = _round_up(C, 8)                 # per-tap K stride (sublane aligned)
    P = _round_up(W + 1, 128)            # 128-aligned workspace interior offset

    x = x_nchw.reshape(N, C, HW)         # NCHW flattened: HW on lanes

    # Host-side relayout: per-block im2col weights and biases, stacked over T.
    w1 = jnp.stack([_pack_weight(p[0], C, KP) for p in params])   # (T, C, 9*KP)
    b1 = jnp.stack([p[1].reshape(C, 1) for p in params])          # (T, C, 1)
    w2 = jnp.stack([_pack_weight(p[2], C, KP) for p in params])
    b2 = jnp.stack([p[3].reshape(C, 1) for p in params])

    out = pl.pallas_call(
        _make_projnetx_kernel(H, W, C, T, KP),
        out_shape=jax.ShapeDtypeStruct((N, C, HW), x.dtype),
        grid_spec=pltpu.PrefetchScalarGridSpec(
            num_scalar_prefetch=0,
            grid=(N,),                       # T folded into an in-kernel loop
            in_specs=[
                pl.BlockSpec((1, C, HW), lambda n: (n, 0, 0)),
                pl.BlockSpec((T, C, 9 * KP), lambda n: (0, 0, 0)),  # resident
                pl.BlockSpec((T, C, 1), lambda n: (0, 0, 0)),       # resident
                pl.BlockSpec((T, C, 9 * KP), lambda n: (0, 0, 0)),  # resident
                pl.BlockSpec((T, C, 1), lambda n: (0, 0, 0)),       # resident
            ],
            out_specs=pl.BlockSpec((1, C, HW), lambda n: (n, 0, 0)),
            scratch_shapes=[
                pltpu.VMEM((C, HW + 2 * P), jnp.float32),   # padded workspace
                pltpu.VMEM((9 * KP, HW), jnp.float32),      # im2col buffer
            ],
        ),
        compiler_params=pltpu.CompilerParams(
            dimension_semantics=("parallel",)),
    )(x, w1, b1, w2, b2)
    return out.reshape(N, C, H, W)


def init_params(key, channels, T):
    """Deterministic synthetic params. Per block: (w1, b1, w2, b2).

    w* are (9, Cin, Cout) with k = ky*3 + kx (PyTorch weight[co,ci,ky,kx]
    permuted); b* are (1, C). Uniform fan-in scaling like Conv2d's default.
    """
    scale = 1.0 / float((channels * 9) ** 0.5)
    params = []
    for _ in range(T):
        key, k1, k2, k3, k4 = jax.random.split(key, 5)
        w1 = jax.random.uniform(k1, (9, channels, channels), jnp.float32, -scale, scale)
        b1 = jax.random.uniform(k2, (1, channels), jnp.float32, -scale, scale)
        w2 = jax.random.uniform(k3, (9, channels, channels), jnp.float32, -scale, scale)
        b2 = jax.random.uniform(k4, (1, channels), jnp.float32, -scale, scale)
        params.append((w1, b1, w2, b2))
    return params


def _ref_forward(x_nchw, params):
    """Pure-JAX reference (XLA conv) for correctness checking."""
    x = x_nchw
    C = x.shape[1]
    for (w1, b1, w2, b2) in params:
        w1_oihw = jnp.transpose(w1.reshape(3, 3, C, C), (3, 2, 0, 1))
        w2_oihw = jnp.transpose(w2.reshape(3, 3, C, C), (3, 2, 0, 1))
        y = jax.lax.conv_general_dilated(
            x, w1_oihw, (1, 1), "SAME", dimension_numbers=("NCHW", "OIHW", "NCHW"))
        y = jnp.maximum(y + b1.reshape(1, C, 1, 1), 0.0)
        y = jax.lax.conv_general_dilated(
            y, w2_oihw, (1, 1), "SAME", dimension_numbers=("NCHW", "OIHW", "NCHW"))
        y = y + b2.reshape(1, C, 1, 1)
        x = x + y
    return x


if __name__ == "__main__":
    channels, T = 4, 2
    N, H, W = 2, 16, 16

    key = jax.random.PRNGKey(0)
    key, xkey = jax.random.split(key)
    x = jax.random.normal(xkey, (N, channels, H, W), jnp.float32)  # NCHW, like PyTorch
    params = init_params(key, channels, T)

    out = projnetx_forward(x, params)
    out = jax.block_until_ready(out)

    ref = _ref_forward(x, params)
    assert out.shape == x.shape
    if not jnp.allclose(out, ref, atol=1e-4, rtol=1e-4):
        raise AssertionError("Pallas ProjnetX output mismatches JAX conv reference")

    print("KERNEL_OK")
</pallas_src>

<mosaic_0001>
module attributes {stable_mosaic.version = 11 : i64} {
  func.func @kernel(%arg0: i32, %arg1: memref<1x4x256xf32, #tpu.memory_space<vmem>>, %arg2: memref<2x4x72xf32, #tpu.memory_space<vmem>>, %arg3: memref<2x4x1xf32, #tpu.memory_space<vmem>>, %arg4: memref<2x4x72xf32, #tpu.memory_space<vmem>>, %arg5: memref<2x4x1xf32, #tpu.memory_space<vmem>>, %arg6: memref<1x4x256xf32, #tpu.memory_space<vmem>>, %arg7: memref<4x512xf32, #tpu.memory_space<vmem>>, %arg8: memref<72x256xf32, #tpu.memory_space<vmem>>) attributes {dimension_semantics = [#tpu.dimension_semantics<parallel>], iteration_bounds = array<i64: 2>, scalar_prefetch = 0 : i64, scratch_operands = 2 : i64, tpu.core_type = #tpu.core_type<tc>, window_params = [{transform_indices = @transform_0, window_bounds = array<i64: 1, 4, 256>}, {pipeline_mode = #tpu.pipeline_mode<synchronous>, transform_indices = @transform_1, window_bounds = array<i64: 2, 4, 72>}, {pipeline_mode = #tpu.pipeline_mode<synchronous>, transform_indices = @transform_2, window_bounds = array<i64: 2, 4, 1>}, {pipeline_mode = #tpu.pipeline_mode<synchronous>, transform_indices = @transform_3, window_bounds = array<i64: 2, 4, 72>}, {pipeline_mode = #tpu.pipeline_mode<synchronous>, transform_indices = @transform_4, window_bounds = array<i64: 2, 4, 1>}, {transform_indices = @transform_5, window_bounds = array<i64: 1, 4, 256>}]} {
    %cst = arith.constant 0.000000e+00 : f32
    %0 = vector.broadcast %cst : f32 to vector<4x128xf32>
    %c0 = arith.constant 0 : index
    %c0_0 = arith.constant 0 : index
    %1 = vector.load %arg7[%c0, %c0_0] : memref<4x512xf32, #tpu.memory_space<vmem>>, vector<4x128xf32>
    tpu.vector_store %arg7[%c0, %c0_0], %0 {strides = array<i32>} : memref<4x512xf32, #tpu.memory_space<vmem>>, vector<4x128xf32>,
    %cst_1 = arith.constant 0.000000e+00 : f32
    %2 = vector.broadcast %cst_1 : f32 to vector<4x128xf32>
    %c0_2 = arith.constant 0 : index
    %c384 = arith.constant 384 : index
    %3 = vector.load %arg7[%c0_2, %c384] : memref<4x512xf32, #tpu.memory_space<vmem>>, vector<4x128xf32>
    tpu.vector_store %arg7[%c0_2, %c384], %2 {strides = array<i32>} : memref<4x512xf32, #tpu.memory_space<vmem>>, vector<4x128xf32>,
    %cst_3 = arith.constant 0.000000e+00 : f32
    %4 = vector.broadcast %cst_3 : f32 to vector<72x256xf32>
    %c0_4 = arith.constant 0 : index
    %c0_5 = arith.constant 0 : index
    %5 = vector.load %arg8[%c0_4, %c0_5] : memref<72x256xf32, #tpu.memory_space<vmem>>, vector<72x256xf32>
    tpu.vector_store %arg8[%c0_4, %c0_5], %4 {strides = array<i32>} : memref<72x256xf32, #tpu.memory_space<vmem>>, vector<72x256xf32>,
    %6 = tpu.iota {dimensions = array<i32: 1>} : vector<4x256xi32>
    %c16_i32 = arith.constant 16 : i32
    %c0_i32 = arith.constant 0 : i32
    %7 = arith.cmpi eq, %c16_i32, %c0_i32 : i32
    %c1_i32 = arith.constant 1 : i32
    %8 = arith.select %7, %c1_i32, %c16_i32 : i32
    %9 = vector.broadcast %8 : i32 to vector<4x256xi32>
    %10 = arith.remsi %6, %9 : vector<4x256xi32>
    %c0_i32_6 = arith.constant 0 : i32
    %11 = vector.broadcast %c0_i32_6 : i32 to vector<4x256xi32>
    %12 = arith.cmpi ne, %10, %11 : vector<4x256xi32>
    %c0_i32_7 = arith.constant 0 : i32
    %13 = vector.broadcast %c0_i32_7 : i32 to vector<4x256xi32>
    %14 = arith.cmpi slt, %10, %13 : vector<4x256xi32>
    %c0_i32_8 = arith.constant 0 : i32
    %15 = arith.cmpi slt, %8, %c0_i32_8 : i32
    %16 = vector.broadcast %15 : i1 to vector<4x256xi1>
    %17 = vector.broadcast %16 : vector<4x256xi1> to vector<4x256xi1>
    %18 = arith.xori %14, %17 : vector<4x256xi1>
    %19 = arith.andi %18, %12 : vector<4x256xi1>
    %20 = vector.broadcast %8 : i32 to vector<4x256xi32>
    %21 = arith.addi %10, %20 : vector<4x256xi32>
    %22 = arith.select %19, %21, %10 : vector<4x256xi1>, vector<4x256xi32>
    %c1_i32_9 = arith.constant 1 : i32
    %23 = vector.broadcast %c1_i32_9 : i32 to vector<4x256xi32>
    %24 = arith.cmpi sge, %22, %23 : vector<4x256xi32>
    %c14_i32 = arith.constant 14 : i32
    %25 = vector.broadcast %c14_i32 : i32 to vector<4x256xi32>
    %26 = arith.cmpi sle, %22, %25 : vector<4x256xi32>
    %c0_10 = arith.constant 0 : index
    %c0_11 = arith.constant 0 : index
    %c0_12 = arith.constant 0 : index
    %27 = vector.load %arg1[%c0_10, %c0_11, %c0_12] : memref<1x4x256xf32, #tpu.memory_space<vmem>>, vector<1x4x256xf32>
    %28 = vector.shape_cast %27 : vector<1x4x256xf32> to vector<4x256xf32>
    %c0_i32_13 = arith.constant 0 : i32
    %c2_i32 = arith.constant 2 : i32
    %29 = arith.addi %c0_i32_13, %c2_i32 : i32
    %c1_i32_14 = arith.constant 1 : i32
    %30 = scf.for %arg9 = %c0_i32_13 to %29 step %c1_i32_14 iter_args(%arg10 = %28) -> (vector<4x256xf32>)  : i32 {
      %34 = arith.index_cast %arg9 : i32 to index
      %c0_19 = arith.constant 0 : index
      %c0_20 = arith.constant 0 : index
      %35 = vector.load %arg2[%34, %c0_19, %c0_20] : memref<2x4x72xf32, #tpu.memory_space<vmem>>, vector<1x4x72xf32>
      %36 = vector.shape_cast %35 : vector<1x4x72xf32> to vector<4x72xf32>
      %37 = arith.index_cast %arg9 : i32 to index
      %c0_21 = arith.constant 0 : index
      %c0_22 = arith.constant 0 : index
      %38 = vector.load %arg3[%37, %c0_21, %c0_22] : memref<2x4x1xf32, #tpu.memory_space<vmem>>, vector<1x4x1xf32>
      %39 = vector.shape_cast %38 : vector<1x4x1xf32> to vector<4x1xf32>
      %c0_23 = arith.constant 0 : index
      %c128 = arith.constant 128 : index
      %40 = vector.load %arg7[%c0_23, %c128] : memref<4x512xf32, #tpu.memory_space<vmem>>, vector<4x256xf32>
      tpu.vector_store %arg7[%c0_23, %c128], %arg10 {strides = array<i32>} : memref<4x512xf32, #tpu.memory_space<vmem>>, vector<4x256xf32>,
      %c0_24 = arith.constant 0 : index
      %c111 = arith.constant 111 : index
      %41 = vector.load %arg7[%c0_24, %c111] : memref<4x512xf32, #tpu.memory_space<vmem>>, vector<4x256xf32>
      %cst_25 = arith.constant 0.000000e+00 : f32
      %42 = vector.broadcast %cst_25 : f32 to vector<4x256xf32>
      %43 = arith.select %24, %41, %42 : vector<4x256xi1>, vector<4x256xf32>
      %c0_26 = arith.constant 0 : index
      %c0_27 = arith.constant 0 : index
      %44 = vector.load %arg8[%c0_26, %c0_27] : memref<72x256xf32, #tpu.memory_space<vmem>>, vector<4x256xf32>
      tpu.vector_store %arg8[%c0_26, %c0_27], %43 {strides = array<i32>} : memref<72x256xf32, #tpu.memory_space<vmem>>, vector<4x256xf32>,
      %c0_28 = arith.constant 0 : index
      %c112 = arith.constant 112 : index
      %45 = vector.load %arg7[%c0_28, %c112] : memref<4x512xf32, #tpu.memory_space<vmem>>, vector<4x256xf32>
      %c8 = arith.constant 8 : index
      %c0_29 = arith.constant 0 : index
      %46 = vector.load %arg8[%c8, %c0_29] : memref<72x256xf32, #tpu.memory_space<vmem>>, vector<4x256xf32>
      tpu.vector_store %arg8[%c8, %c0_29], %45 {strides = array<i32>} : memref<72x256xf32, #tpu.memory_space<vmem>>, vector<4x256xf32>,
      %c0_30 = arith.constant 0 : index
      %c113 = arith.constant 113 : index
      %47 = vector.load %arg7[%c0_30, %c113] : memref<4x512xf32, #tpu.memory_space<vmem>>, vector<4x256xf32>
      %cst_31 = arith.constant 0.000000e+00 : f32
      %48 = vector.broadcast %cst_31 : f32 to vector<4x256xf32>
      %49 = arith.select %26, %47, %48 : vector<4x256xi1>, vector<4x256xf32>
      %c16 = arith.constant 16 : index
      %c0_32 = arith.constant 0 : index
      %50 = vector.load %arg8[%c16, %c0_32] : memref<72x256xf32, #tpu.memory_space<vmem>>, vector<4x256xf32>
      tpu.vector_store %arg8[%c16, %c0_32], %49 {strides = array<i32>} : memref<72x256xf32, #tpu.memory_space<vmem>>, vector<4x256xf32>,
      %c0_33 = arith.constant 0 : index
      %c127 = arith.constant 127 : index
      %51 = vector.load %arg7[%c0_33, %c127] : memref<4x512xf32, #tpu.memory_space<vmem>>, vector<4x256xf32>
      %cst_34 = arith.constant 0.000000e+00 : f32
      %52 = vector.broadcast %cst_34 : f32 to vector<4x256xf32>
      %53 = arith.select %24, %51, %52 : vector<4x256xi1>, vector<4x256xf32>
      %c24 = arith.constant 24 : index
      %c0_35 = arith.constant 0 : index
      %54 = vector.load %arg8[%c24, %c0_35] : memref<72x256xf32, #tpu.memory_space<vmem>>, vector<4x256xf32>
      tpu.vector_store %arg8[%c24, %c0_35], %53 {strides = array<i32>} : memref<72x256xf32, #tpu.memory_space<vmem>>, vector<4x256xf32>,
      %c0_36 = arith.constant 0 : index
      %c128_37 = arith.constant 128 : index
      %55 = vector.load %arg7[%c0_36, %c128_37] : memref<4x512xf32, #tpu.memory_space<vmem>>, vector<4x256xf32>
      %c32 = arith.constant 32 : index
      %c0_38 = arith.constant 0 : index
      %56 = vector.load %arg8[%c32, %c0_38] : memref<72x256xf32, #tpu.memory_space<vmem>>, vector<4x256xf32>
      tpu.vector_store %arg8[%c32, %c0_38], %55 {strides = array<i32>} : memref<72x256xf32, #tpu.memory_space<vmem>>, vector<4x256xf32>,
      %c0_39 = arith.constant 0 : index
      %c129 = arith.constant 129 : index
      %57 = vector.load %arg7[%c0_39, %c129] : memref<4x512xf32, #tpu.memory_space<vmem>>, vector<4x256xf32>
      %cst_40 = arith.constant 0.000000e+00 : f32
      %58 = vector.broadcast %cst_40 : f32 to vector<4x256xf32>
      %59 = arith.select %26, %57, %58 : vector<4x256xi1>, vector<4x256xf32>
      %c40 = arith.constant 40 : index
      %c0_41 = arith.constant 0 : index
      %60 = vector.load %arg8[%c40, %c0_41] : memref<72x256xf32, #tpu.memory_space<vmem>>, vector<4x256xf32>
      tpu.vector_store %arg8[%c40, %c0_41], %59 {strides = array<i32>} : memref<72x256xf32, #tpu.memory_space<vmem>>, vector<4x256xf32>,
      %c0_42 = arith.constant 0 : index
      %c143 = arith.constant 143 : index
      %61 = vector.load %arg7[%c0_42, %c143] : memref<4x512xf32, #tpu.memory_space<vmem>>, vector<4x256xf32>
      %cst_43 = arith.constant 0.000000e+00 : f32
      %62 = vector.broadcast %cst_43 : f32 to vector<4x256xf32>
      %63 = arith.select %24, %61, %62 : vector<4x256xi1>, vector<4x256xf32>
      %c48 = arith.constant 48 : index
      %c0_44 = arith.constant 0 : index
      %64 = vector.load %arg8[%c48, %c0_44] : memref<72x256xf32, #tpu.memory_space<vmem>>, vector<4x256xf32>
      tpu.vector_store %arg8[%c48, %c0_44], %63 {strides = array<i32>} : memref<72x256xf32, #tpu.memory_space<vmem>>, vector<4x256xf32>,
      %c0_45 = arith.constant 0 : index
      %c144 = arith.constant 144 : index
      %65 = vector.load %arg7[%c0_45, %c144] : memref<4x512xf32, #tpu.memory_space<vmem>>, vector<4x256xf32>
      %c56 = arith.constant 56 : index
      %c0_46 = arith.constant 0 : index
      %66 = vector.load %arg8[%c56, %c0_46] : memref<72x256xf32, #tpu.memory_space<vmem>>, vector<4x256xf32>
      tpu.vector_store %arg8[%c56, %c0_46], %65 {strides = array<i32>} : memref<72x256xf32, #tpu.memory_space<vmem>>, vector<4x256xf32>,
      %c0_47 = arith.constant 0 : index
      %c145 = arith.constant 145 : index
      %67 = vector.load %arg7[%c0_47, %c145] : memref<4x512xf32, #tpu.memory_space<vmem>>, vector<4x256xf32>
      %cst_48 = arith.constant 0.000000e+00 : f32
      %68 = vector.broadcast %cst_48 : f32 to vector<4x256xf32>
      %69 = arith.select %26, %67, %68 : vector<4x256xi1>, vector<4x256xf32>
      %c64 = arith.constant 64 : index
      %c0_49 = arith.constant 0 : index
      %70 = vector.load %arg8[%c64, %c0_49] : memref<72x256xf32, #tpu.memory_space<vmem>>, vector<4x256xf32>
      tpu.vector_store %arg8[%c64, %c0_49], %69 {strides = array<i32>} : memref<72x256xf32, #tpu.memory_space<vmem>>, vector<4x256xf32>,
      %c0_50 = arith.constant 0 : index
      %c0_51 = arith.constant 0 : index
      %71 = vector.load %arg8[%c0_50, %c0_51] : memref<72x256xf32, #tpu.memory_space<vmem>>, vector<72x256xf32>
      %cst_52 = arith.constant dense<0.000000e+00> : vector<4x256xf32>
      %72 = tpu.matmul %36, %71, %cst_52 {dimension_numbers = #tpu.dot_dimension_numbers<[1], [0], [0], [1], [0, 0, 1, 1], [], []>} : vector<4x72xf32>, vector<72x256xf32>, vector<4x256xf32> -> vector<4x256xf32>
      %73 = vector.broadcast %39 : vector<4x1xf32> to vector<4x256xf32>
      %74 = arith.addf %72, %73 : vector<4x256xf32>
      %cst_53 = arith.constant 0.000000e+00 : f32
      %75 = vector.broadcast %cst_53 : f32 to vector<4x256xf32>
      %76 = arith.maximumf %74, %75 : vector<4x256xf32>
      %77 = arith.index_cast %arg9 : i32 to index
      %c0_54 = arith.constant 0 : index
      %c0_55 = arith.constant 0 : index
      %78 = vector.load %arg4[%77, %c0_54, %c0_55] : memref<2x4x72xf32, #tpu.memory_space<vmem>>, vector<1x4x72xf32>
      %79 = vector.shape_cast %78 : vector<1x4x72xf32> to vector<4x72xf32>
      %80 = arith.index_cast %arg9 : i32 to index
      %c0_56 = arith.constant 0 : index
      %c0_57 = arith.constant 0 : index
      %81 = vector.load %arg5[%80, %c0_56, %c0_57] : memref<2x4x1xf32, #tpu.memory_space<vmem>>, vector<1x4x1xf32>
      %82 = vector.shape_cast %81 : vector<1x4x1xf32> to vector<4x1xf32>
      %c0_58 = arith.constant 0 : index
      %c128_59 = arith.constant 128 : index
      %83 = vector.load %arg7[%c0_58, %c128_59] : memref<4x512xf32, #tpu.memory_space<vmem>>, vector<4x256xf32>
      tpu.vector_store %arg7[%c0_58, %c128_59], %76 {strides = array<i32>} : memref<4x512xf32, #tpu.memory_space<vmem>>, vector<4x256xf32>,
      %c0_60 = arith.constant 0 : index
      %c111_61 = arith.constant 111 : index
      %84 = vector.load %arg7[%c0_60, %c111_61] : memref<4x512xf32, #tpu.memory_space<vmem>>, vector<4x256xf32>
      %cst_62 = arith.constant 0.000000e+00 : f32
      %85 = vector.broadcast %cst_62 : f32 to vector<4x256xf32>
      %86 = arith.select %24, %84, %85 : vector<4x256xi1>, vector<4x256xf32>
      %c0_63 = arith.constant 0 : index
      %c0_64 = arith.constant 0 : index
      %87 = vector.load %arg8[%c0_63, %c0_64] : memref<72x256xf32, #tpu.memory_space<vmem>>, vector<4x256xf32>
      tpu.vector_store %arg8[%c0_63, %c0_64], %86 {strides = array<i32>} : memref<72x256xf32, #tpu.memory_space<vmem>>, vector<4x256xf32>,
      %c0_65 = arith.constant 0 : index
      %c112_66 = arith.constant 112 : index
      %88 = vector.load %arg7[%c0_65, %c112_66] : memref<4x512xf32, #tpu.memory_space<vmem>>, vector<4x256xf32>
      %c8_67 = arith.constant 8 : index
      %c0_68 = arith.constant 0 : index
      %89 = vector.load %arg8[%c8_67, %c0_68] : memref<72x256xf32, #tpu.memory_space<vmem>>, vector<4x256xf32>
      tpu.vector_store %arg8[%c8_67, %c0_68], %88 {strides = array<i32>} : memref<72x256xf32, #tpu.memory_space<vmem>>, vector<4x256xf32>,
      %c0_69 = arith.constant 0 : index
      %c113_70 = arith.constant 113 : index
      %90 = vector.load %arg7[%c0_69, %c113_70] : memref<4x512xf32, #tpu.memory_space<vmem>>, vector<4x256xf32>
      %cst_71 = arith.constant 0.000000e+00 : f32
      %91 = vector.broadcast %cst_71 : f32 to vector<4x256xf32>
      %92 = arith.select %26, %90, %91 : vector<4x256xi1>, vector<4x256xf32>
      %c16_72 = arith.constant 16 : index
      %c0_73 = arith.constant 0 : index
      %93 = vector.load %arg8[%c16_72, %c0_73] : memref<72x256xf32, #tpu.memory_space<vmem>>, vector<4x256xf32>
      tpu.vector_store %arg8[%c16_72, %c0_73], %92 {strides = array<i32>} : memref<72x256xf32, #tpu.memory_space<vmem>>, vector<4x256xf32>,
      %c0_74 = arith.constant 0 : index
      %c127_75 = arith.constant 127 : index
      %94 = vector.load %arg7[%c0_74, %c127_75] : memref<4x512xf32, #tpu.memory_space<vmem>>, vector<4x256xf32>
      %cst_76 = arith.constant 0.000000e+00 : f32
      %95 = vector.broadcast %cst_76 : f32 to vector<4x256xf32>
      %96 = arith.select %24, %94, %95 : vector<4x256xi1>, vector<4x256xf32>
      %c24_77 = arith.constant 24 : index
      %c0_78 = arith.constant 0 : index
      %97 = vector.load %arg8[%c24_77, %c0_78] : memref<72x256xf32, #tpu.memory_space<vmem>>, vector<4x256xf32>
      tpu.vector_store %arg8[%c24_77, %c0_78], %96 {strides = array<i32>} : memref<72x256xf32, #tpu.memory_space<vmem>>, vector<4x256xf32>,
      %c0_79 = arith.constant 0 : index
      %c128_80 = arith.constant 128 : index
      %98 = vector.load %arg7[%c0_79, %c128_80] : memref<4x512xf32, #tpu.memory_space<vmem>>, vector<4x256xf32>
      %c32_81 = arith.constant 32 : index
      %c0_82 = arith.constant 0 : index
      %99 = vector.load %arg8[%c32_81, %c0_82] : memref<72x256xf32, #tpu.memory_space<vmem>>, vector<4x256xf32>
      tpu.vector_store %arg8[%c32_81, %c0_82], %98 {strides = array<i32>} : memref<72x256xf32, #tpu.memory_space<vmem>>, vector<4x256xf32>,
      %c0_83 = arith.constant 0 : index
      %c129_84 = arith.constant 129 : index
      %100 = vector.load %arg7[%c0_83, %c129_84] : memref<4x512xf32, #tpu.memory_space<vmem>>, vector<4x256xf32>
      %cst_85 = arith.constant 0.000000e+00 : f32
      %101 = vector.broadcast %cst_85 : f32 to vector<4x256xf32>
      %102 = arith.select %26, %100, %101 : vector<4x256xi1>, vector<4x256xf32>
      %c40_86 = arith.constant 40 : index
      %c0_87 = arith.constant 0 : index
      %103 = vector.load %arg8[%c40_86, %c0_87] : memref<72x256xf32, #tpu.memory_space<vmem>>, vector<4x256xf32>
      tpu.vector_store %arg8[%c40_86, %c0_87], %102 {strides = array<i32>} : memref<72x256xf32, #tpu.memory_space<vmem>>, vector<4x256xf32>,
      %c0_88 = arith.constant 0 : index
      %c143_89 = arith.constant 143 : index
      %104 = vector.load %arg7[%c0_88, %c143_89] : memref<4x512xf32, #tpu.memory_space<vmem>>, vector<4x256xf32>
      %cst_90 = arith.constant 0.000000e+00 : f32
      %105 = vector.broadcast %cst_90 : f32 to vector<4x256xf32>
      %106 = arith.select %24, %104, %105 : vector<4x256xi1>, vector<4x256xf32>
      %c48_91 = arith.constant 48 : index
      %c0_92 = arith.constant 0 : index
      %107 = vector.load %arg8[%c48_91, %c0_92] : memref<72x256xf32, #tpu.memory_space<vmem>>, vector<4x256xf32>
      tpu.vector_store %arg8[%c48_91, %c0_92], %106 {strides = array<i32>} : memref<72x256xf32, #tpu.memory_space<vmem>>, vector<4x256xf32>,
      %c0_93 = arith.constant 0 : index
      %c144_94 = arith.constant 144 : index
      %108 = vector.load %arg7[%c0_93, %c144_94] : memref<4x512xf32, #tpu.memory_space<vmem>>, vector<4x256xf32>
      %c56_95 = arith.constant 56 : index
      %c0_96 = arith.constant 0 : index
      %109 = vector.load %arg8[%c56_95, %c0_96] : memref<72x256xf32, #tpu.memory_space<vmem>>, vector<4x256xf32>
      tpu.vector_store %arg8[%c56_95, %c0_96], %108 {strides = array<i32>} : memref<72x256xf32, #tpu.memory_space<vmem>>, vector<4x256xf32>,
      %c0_97 = arith.constant 0 : index
      %c145_98 = arith.constant 145 : index
      %110 = vector.load %arg7[%c0_97, %c145_98] : memref<4x512xf32, #tpu.memory_space<vmem>>, vector<4x256xf32>
      %cst_99 = arith.constant 0.000000e+00 : f32
      %111 = vector.broadcast %cst_99 : f32 to vector<4x256xf32>
      %112 = arith.select %26, %110, %111 : vector<4x256xi1>, vector<4x256xf32>
      %c64_100 = arith.constant 64 : index
      %c0_101 = arith.constant 0 : index
      %113 = vector.load %arg8[%c64_100, %c0_101] : memref<72x256xf32, #tpu.memory_space<vmem>>, vector<4x256xf32>
      tpu.vector_store %arg8[%c64_100, %c0_101], %112 {strides = array<i32>} : memref<72x256xf32, #tpu.memory_space<vmem>>, vector<4x256xf32>,
      %c0_102 = arith.constant 0 : index
      %c0_103 = arith.constant 0 : index
      %114 = vector.load %arg8[%c0_102, %c0_103] : memref<72x256xf32, #tpu.memory_space<vmem>>, vector<72x256xf32>
      %cst_104 = arith.constant dense<0.000000e+00> : vector<4x256xf32>
      %115 = tpu.matmul %79, %114, %cst_104 {dimension_numbers = #tpu.dot_dimension_numbers<[1], [0], [0], [1], [0, 0, 1, 1], [], []>} : vector<4x72xf32>, vector<72x256xf32>, vector<4x256xf32> -> vector<4x256xf32>
      %116 = vector.broadcast %82 : vector<4x1xf32> to vector<4x256xf32>
      %117 = arith.addf %115, %116 : vector<4x256xf32>
      %118 = arith.addf %arg10, %117 : vector<4x256xf32>
      scf.yield %118 : vector<4x256xf32>
    }
    %c2_i32_15 = arith.constant 2 : i32
    %c0_16 = arith.constant 0 : index
    %c0_17 = arith.constant 0 : index
    %c0_18 = arith.constant 0 : index
    %31 = vector.load %arg6[%c0_16, %c0_17, %c0_18] : memref<1x4x256xf32, #tpu.memory_space<vmem>>, vector<1x4x256xf32>
    %32 = vector.shape_cast %31 : vector<1x4x256xf32> to vector<4x256xf32>
    %33 = vector.shape_cast %30 : vector<4x256xf32> to vector<1x4x256xf32>
    tpu.vector_store %arg6[%c0_16, %c0_17, %c0_18], %33 {strides = array<i32>} : memref<1x4x256xf32, #tpu.memory_space<vmem>>, vector<1x4x256xf32>,
    return
  }
  func.func @transform_0(%arg0: i32) -> (i32, i32, i32) {
    %c0_i32 = arith.constant 0 : i32
    %c0_i32_0 = arith.constant 0 : i32
    %c0_i32_1 = arith.constant 0 : i32
    return %arg0, %c0_i32, %c0_i32_0 : i32, i32, i32
  }
  func.func @transform_1(%arg0: i32) -> (i32, i32, i32) {
    %c0_i32 = arith.constant 0 : i32
    %c0_i32_0 = arith.constant 0 : i32
    %c0_i32_1 = arith.constant 0 : i32
    %c0_i32_2 = arith.constant 0 : i32
    return %c0_i32, %c0_i32_0, %c0_i32_1 : i32, i32, i32
  }
  func.func @transform_2(%arg0: i32) -> (i32, i32, i32) {
    %c0_i32 = arith.constant 0 : i32
    %c0_i32_0 = arith.constant 0 : i32
    %c0_i32_1 = arith.constant 0 : i32
    %c0_i32_2 = arith.constant 0 : i32
    return %c0_i32, %c0_i32_0, %c0_i32_1 : i32, i32, i32
  }
  func.func @transform_3(%arg0: i32) -> (i32, i32, i32) {
    %c0_i32 = arith.constant 0 : i32
    %c0_i32_0 = arith.constant 0 : i32
    %c0_i32_1 = arith.constant 0 : i32
    %c0_i32_2 = arith.constant 0 : i32
    return %c0_i32, %c0_i32_0, %c0_i32_1 : i32, i32, i32
  }
  func.func @transform_4(%arg0: i32) -> (i32, i32, i32) {
    %c0_i32 = arith.constant 0 : i32
    %c0_i32_0 = arith.constant 0 : i32
    %c0_i32_1 = arith.constant 0 : i32
    %c0_i32_2 = arith.constant 0 : i32
    return %c0_i32, %c0_i32_0, %c0_i32_1 : i32, i32, i32
  }
  func.func @transform_5(%arg0: i32) -> (i32, i32, i32) {
    %c0_i32 = arith.constant 0 : i32
    %c0_i32_0 = arith.constant 0 : i32
    %c0_i32_1 = arith.constant 0 : i32
    return %arg0, %c0_i32, %c0_i32_0 : i32, i32, i32
  }
}

</mosaic_0001>

<bundles_post_ra>
// kernel: tpu_custom_call.1
= control target key start
LH: loop header
LB: loop body
LE: loop exit
PB: predicated region body
PF: predicated region fallthrough
CT: control target
= control target key end

     0   :  { %10 = vsyncpa [#allocation5], 0  ;;  %s1640_s0 = inlined_call_operand.vmem [shape: f32[2,4,256], index: 0, kind: input, shape index: {}]   ;;  %s1641_s1 = inlined_call_operand.hbm [shape: f32[2,4,72], index: 1, kind: input, shape index: {}]   ;;  %s1642_s2 = inlined_call_operand.vmem [shape: f32[2,4,1], index: 2, kind: input, shape index: {}]   ;;  %s1643_s3 = inlined_call_operand.hbm [shape: f32[2,4,72], index: 3, kind: input, shape index: {}]   ;;  %s1644_s4 = inlined_call_operand.vmem [shape: f32[2,4,1], index: 4, kind: input, shape index: {}]   ;;  %s1645_s5 = inlined_call_operand.hbm [shape: f32[2,4,256], index: 5, kind: output, shape index: {}]  }
   0x1   :  { %11 = vsyncpa [#allocation8], 0 }
   0x2   :  { %12 = vsyncpa [#allocation6], 0 }
   0x3   :  { %14 = vsyncpa [#allocation6 + $0x1], 0  ;;  %s1296_s18 = smov 0   ;;  %s1298_s19 = smov 0  }
   0x4   :  { %s1300_s20 = smov 0   ;;  %s1302_s21 = smov 0  }
   0x5 LB: > { %s1317_s22 = sadd.s32 4294967295, %s1242_s21   ;;  %s991_s23 = sadd.s32 4294967294, %s1242_s21   ;;  %s1242_s21 = sphi %s1302_s21, %s1661_s21   ;;  %s1238_s20 = sphi %s1300_s20, %s1660_s20   ;;  %s1234_s19 = sphi %s1298_s19, %s1659_s19   ;;  %s1230_s18 = sphi %s1296_s18, %s1658_s18  }
   0x6   : > { %s1321_s24 = sadd.s32 1, %s1242_s21   ;;  %s137_s25 = sadd.s32 1, %s1238_s20 }
   0x7   : > { %s134_s26 = ssub.s32 %s1242_s21, %s1321_s24  ;;  %p147_p0 = scmp.ne.s32.totalorder %s1238_s20, %s1234_s19 }
   0x8   : > { %p135_p1 = scmp.eq.s32.totalorder %s134_s26, 0  ;;  %p148_p2 = scmp.eq.s32.totalorder %s1317_s22, 1 }
   0x9   : > { %p153_p3 = scmp.ne.s32.totalorder %s1234_s19, %s1230_s18  ;;  %p154_p4 = scmp.eq.s32.totalorder %s991_s23, 1 }
   0xa   : > { %s1332_s27 = scalar_select %p135_p1, %s1238_s20, %s137_s25  }
   0xb   : > { %p1334_p5 = por %p148_p2, %p147_p0  ;;  %p1338_p6 = por %p154_p4, %p153_p3 }
   0xc   : > { %p992_p7 = scmp.ge.s32.totalorder %s1242_s21, 1  ;;  %p161_p8 = scmp.lt.s32.totalorder %s1242_s21, 3 }
   0xd   : > { %p1035_p9 = scmp.eq.s32.totalorder %s1317_s22, 0  ;;  %s172_s8 = sshll.u32 %s1641_s1, 4  ;;  %s173_s8 = int_to_ptr.hbm [resolvable:$true] %s172_s8 }
   0xe   : > { %p1345_p10 = pnand %p992_p7, %p161_p8  ;;  %s1252_s9 = smov [#allocation4]  }
   0xf   : > { %s174_s10 = sshll.u32 %s1252_s9, 4  ;;  %s189_s13 = sshll.u32 %s1643_s3, 4  ;;  %s175_s10 = int_to_ptr.vmem [resolvable:$true] %s174_s10  ;;  %s190_s13 = int_to_ptr.hbm [resolvable:$true] %s189_s13 }
  0x10   : > { %p1024_p11 = pneg %p1345_p10  ;;  %s1253_s14 = smov 64  }
  0x11   : > { %s1254_s15 = smov 4   ;;  %s1255_s16 = smov [#allocation7]  }
  0x12   : > { %p1025_p12 = pnand %p1035_p9, %p1024_p11  ;;  %s191_s17 = sshll.u32 %s1255_s16, 4  ;;  %s192_s17 = int_to_ptr.vmem [resolvable:$true] %s191_s17 }
  0x13   : > { %218 = sbr.rel (%p1345_p10) target bundleno = 785 (0x311), region = 40 }
  0x14   : > { %1027 = dma.hbm_to_vmem [thread:$0]  (!%p1025_p12), %s173_s8, 128, %s175_s10, [#allocation5], %s1253_s14, %s1253_s14, %s1254_s15  }
  0x15   : > { %1030 = dma.hbm_to_vmem [thread:$0]  (!%p1025_p12), %s190_s13, 128, %s192_s17, [#allocation8], %s1253_s14, %s1253_s14, %s1254_s15  }
  0x18   : > { %1217 = dma.done.wait (%p1035_p9), [#allocation5], 128  }
  0x19   : > { %1219 = vsyncadd (%p1035_p9), [#allocation5], 4294967168 }
  0x1a   : > { %1221 = dma.done.wait (%p1035_p9), [#allocation8], 128  }
  0x1b   : > { %1223 = vsyncadd (%p1035_p9), [#allocation8], 4294967168  ;;  %p252_p13 = scmp.lt.s32.totalorder %s1317_s22, 1  ;;  %s249_s23 = sand.u32 1, %s1234_s19   ;;  %v277_v0 = vlaneseq  ;;  %v1256_v1 = vmov 0.0  }
  0x1c   : > { %s1373_s25 = sshll.u32 %s249_s23, 3  ;;  %257 = vst [vmem:[#allocation2] sm:$0xf] %v1256_v1  ;;  %s1398_s10 = smov 0  }
  0x1d   : > { %s253_s26 = scalar_select %p252_p13, %s1317_s22, 1  ;;  %258 = vst [vmem:[#allocation2 + $0xc] sm:$0xf] %v1256_v1  ;;  %v278_v2 = vand.u32 127, %v277_v0 }
  0x1e   : > { %259 = vst [vmem:[#allocation3] sm:$0xff] %v1256_v1  ;;  %s251_s9 = scalar_lea.vmem [#allocation9], %s1373_s25 }
  0x1f   : > { %s1012_s30 = sshll.u32 %s253_s26, 3  ;;  %260 = vst [vmem:[#allocation3 + $0x38] sm:$0xff] %v1256_v1  ;;  %v279_v3 = vadd.s32 128, %v278_v2  ;;  %v284_v4 = vand.u32 15, %v278_v2 }
  0x20   : > { %s256_s8 = scalar_lea.vmem %s1640_s0, %s1012_s30  ;;  %261 = vst [vmem:[#allocation3 + $0x78] sm:$0xff] %v1256_v1 }
  0x21   : > { %262 = vst [vmem:[#allocation3 + $0x58] sm:$0xff] %v1256_v1  ;;  %v291_v5 = vand.u32 15, %v279_v3  ;;  %vm1379_vm0 = vcmp.ge.s32.totalorder %v284_v4, 1  ;;  %vm1383_vm1 = vcmp.le.s32.totalorder %v284_v4, 14  ;;  %v308_v8 = vld [vmem:[%s256_s8] sm:$0xff]  }
  0x22   : > { %263 = vst [vmem:[#allocation3 + $0x20] sm:$0xff] %v1256_v1 }
  0x23   : > { %264 = vst [vmem:[#allocation3 + $0x8] sm:$0xff] %v1256_v1  ;;  %vm1387_vm2 = vcmp.ge.s32.totalorder %v291_v5, 1  ;;  %vm1391_vm3 = vcmp.le.s32.totalorder %v291_v5, 14 }
  0x24   : > { %265 = vst [vmem:[#allocation3 + $0x70] sm:$0xff] %v1256_v1 }
  0x25   : > { %266 = vst [vmem:[#allocation3 + $0x80] sm:$0xff] %v1256_v1 }
  0x26   : > { %267 = vst [vmem:[#allocation3 + $0x88] sm:$0xff] %v1256_v1 }
  0x27   : > { %268 = vst [vmem:[#allocation3 + $0x40] sm:$0xff] %v1256_v1 }
  0x28   : > { %269 = vst [vmem:[#allocation3 + $0x50] sm:$0xff] %v1256_v1 }
  0x29   : > { %270 = vst [vmem:[#allocation3 + $0x28] sm:$0xff] %v1256_v1 }
  0x2a   : > { %271 = vst [vmem:[#allocation3 + $0x10] sm:$0xff] %v1256_v1 }
  0x2b   : > { %272 = vst [vmem:[#allocation3 + $0x48] sm:$0xff] %v1256_v1 }
  0x2c   : > { %273 = vst [vmem:[#allocation3 + $0x30] sm:$0xff] %v1256_v1 }
  0x2d   : > { %274 = vst [vmem:[#allocation3 + $0x18] sm:$0xff] %v1256_v1 }
  0x2e   : > { %275 = vst [vmem:[#allocation3 + $0x68] sm:$0xff] %v1256_v1 }
  0x2f   : > { %276 = vst [vmem:[#allocation3 + $0x60] sm:$0xff] %v1256_v1 }
  0x30 LB: >> { %321 = vst [vmem:[#allocation2 + $0x4] sm:$0xff] %v1246_v8  ;;  %s1257_s11 = smov 15   ;;  %v430_v25 = vld [vmem:[#allocation2 + $0xc] sm:$0xf]  ;;  %s1258_s12 = smov 1   ;;  %vm386_vm4 = vcmask 121856   ;;  %s1250_s10 = sphi %s1398_s10, %s314_s10   ;;  %v1246_v8 = vphi %v308_v8, %v1657_v8  }
  0x31   : >> { %v455_v29 = vld [vmem:[#allocation2 + $0xc] sm:$0xf]  ;;  %s1259_s13 = smov 127   ;;  %s1260_s14 = smov 113   ;;  %vm411_vm5 = vcmask 7168   ;;  %vm445_vm6 = vcmask 1039360  }
  0x32   : >> { %v480_v33 = vld [vmem:[#allocation2 + $0xc] sm:$0xf]  ;;  %s1261_s15 = smov 111   ;;  %s1262_s16 = smov 112   ;;  %vm470_vm7 = vcmask 924672   ;;  %vm495_vm8 = vcmask 916480  }
  0x33   : >> { %v503_v37 = vld [vmem:[#allocation2 + $0xc] sm:$0xf]  ;;  %s1263_s17 = smov 16   ;;  %s1264_s26 = smov 17   ;;  %vm338_vm9 = vcmask 138240   ;;  %vm518_vm10 = vcmask 908288  }
  0x34   : >> { %s1485_s30 = sshll.u32 %s1250_s10, 2  ;;  %vm363_vm11 = vcmask 130048   ;;  %vm550_vm12 = vcmask 588800   ;;  %vm603_vm13 = vcmask 1043456   ;;  %s314_s10 = sadd.s32 1, %s1250_s10  }
  0x35   : >> { %s319_s8 = scalar_lea.vmem %s1642_s2, %s1485_s30  ;;  %s317_s6 = scalar_lea.vmem [#allocation4], %s1485_s30 }
  0x36   : >> { %p311_p0 = scmp.ge.s32.totalorder %s314_s10, 2  }
  0x37   : >> { %v323_v11 = vld [vmem:[#allocation2 + $0x8] sm:$0xf]  ;;  %v322_v12 = vld [vmem:[#allocation2] sm:$0xff]  ;;  %s878_s10 = scalar_lea.sflag (%p311_p0), [#allocation6], %s249_s23 }
  0x38   : >> { %328 = vst [vmem:[#allocation1 + $0x10] ss:$2 sm:$0xff] %v323_v11  ;;  %v348_v13 = vld [vmem:[#allocation2 + $0x8] sm:$0xf] }
  0x39   : >> { %326 = vst [vmem:[#allocation1] ss:$2 sm:$0xff] %v322_v12  ;;  %v371_v17 = vld [vmem:[#allocation2 + $0x8] sm:$0xf] }
  0x3a   : >> { %v396_v21 = vld [vmem:[#allocation2 + $0x8] sm:$0xf] }
  0x3f   : >> { %v1407_v14 = vld.sshfl [vmem:[#allocation1 + $0x10] sm:$0xff pattern:$0x75316420] }
  0x40   : >> { %353 = vst [vmem:[#allocation1 + $0x10] ss:$2 sm:$0xff] %v348_v13  ;;  %v1409_v15 = vld.sshfl [vmem:[#allocation1] sm:$0xff pattern:$0x75316420] }
  0x41   : >> { %v1411_v16 = vld.sshfl [vmem:[#allocation1 + $0x8] sm:$0xff pattern:$0x75316420] }
  0x42   : >> { %351 = vst [vmem:[#allocation1] ss:$2 sm:$0xff] %v322_v12 }
  0x47   : >> { %v1413_v18 = vld.sshfl [vmem:[#allocation1 + $0x10] sm:$0xff pattern:$0x75316420] }
  0x48   : >> { %376 = vst [vmem:[#allocation1 + $0x10] ss:$2 sm:$0xff] %v371_v17 }
  0x49   : >> { %v1415_v19 = vld.sshfl [vmem:[#allocation1] sm:$0xff pattern:$0x75316420]  ;;  %v1417_v20 = vld.sshfl [vmem:[#allocation1 + $0x8] sm:$0xff pattern:$0x75316420] }
  0x4a   : >> { %374 = vst [vmem:[#allocation1] ss:$2 sm:$0xff] %v322_v12 }
  0x4f   : >> { %v379_v22 = vld.sshfl [vmem:[#allocation1 + $0x10] sm:$0xff pattern:$0x75316420] }
  0x50   : >> { %384 = vrot.lane.b32.xlu0 %v379_v22, %s1257_s11  ;;  %401 = vst [vmem:[#allocation1 + $0x10] ss:$2 sm:$0xff] %v396_v21 }
  0x51   : >> { %v378_v23 = vld.sshfl [vmem:[#allocation1 + $0x8] sm:$0xff pattern:$0x75316420]  ;;  %v377_v24 = vld.sshfl [vmem:[#allocation1] sm:$0xff pattern:$0x75316420] }
  0x52   : >> { %382 = vrot.lane.b32.xlu2 %v378_v23, %s1257_s11  ;;  %399 = vst [vmem:[#allocation1] ss:$2 sm:$0xff] %v322_v12 }
  0x57   : >> { %v404_v26 = vld.sshfl [vmem:[#allocation1 + $0x10] sm:$0xff pattern:$0x75316420] }
  0x58   : >> { %409 = vrot.lane.b32.xlu1 %v404_v26, %s1258_s12  ;;  %435 = vst [vmem:[#allocation1 + $0x10] ss:$2 sm:$0xff] %v430_v25 }
  0x59   : >> { %v403_v27 = vld.sshfl [vmem:[#allocation1 + $0x8] sm:$0xff pattern:$0x75316420]  ;;  %v402_v28 = vld.sshfl [vmem:[#allocation1] sm:$0xff pattern:$0x75316420] }
  0x5a   : >> { %407 = vrot.lane.b32.xlu0 %v403_v27, %s1258_s12  ;;  %380 = vrot.lane.b32.xlu2 %v377_v24, %s1257_s11  ;;  %422 = vst [vmem:[#allocation1] ss:$2 sm:$0xff] %v1246_v8 }
  0x5f   : >> { %v438_v30 = vld.sshfl [vmem:[#allocation1 + $0x10] sm:$0xff pattern:$0x75316420] }
  0x60   : >> { %405 = vrot.lane.b32.xlu1 %v402_v28, %s1258_s12  ;;  %460 = vst [vmem:[#allocation1 + $0x10] ss:$2 sm:$0xff] %v455_v29  ;;  %v320_v28 = vld [vmem:[%s319_s8] sm:$0xf]  ;;  %v1265_v29 = vmov 0  }
  0x61   : >> { %v423_v31 = vld.sshfl [vmem:[#allocation1] sm:$0xff pattern:$0x75316420]  ;;  %v424_v32 = vld.sshfl [vmem:[#allocation1 + $0x8] sm:$0xff pattern:$0x75316420]  ;;  %1102 = vset.pattern.permute.xlu0 %v1265_v29  ;;  %1103 = vset.pattern.permute.xlu2 %v1265_v29 }
  0x62   : >> { %443 = vrot.lane.b32.xlu0 %v438_v30, %s1259_s13  ;;  %433 = vst [vmem:[#allocation1] ss:$2 sm:$0xff] %v1246_v8 }
  0x63   : >> { %427 = vst [vmem:[#allocation3 + $0x88] sm:$0xf] %v423_v31 }
  0x64   : >> { %428 = vst [vmem:[#allocation3 + $0x40] sm:$0xf] %v424_v32 }
  0x67   : >> { %v463_v34 = vld.sshfl [vmem:[#allocation1 + $0x10] sm:$0xff pattern:$0x75316420] }
  0x68   : >> { %485 = vst [vmem:[#allocation1 + $0x10] ss:$2 sm:$0xff] %v480_v33 }
  0x69   : >> { %v437_v35 = vld.sshfl [vmem:[#allocation1 + $0x8] sm:$0xff pattern:$0x75316420]  ;;  %v436_v36 = vld.sshfl [vmem:[#allocation1] sm:$0xff pattern:$0x75316420] }
  0x6a   : >> { %468 = vrot.lane.b32.xlu0 %v463_v34, %s1260_s14  ;;  %441 = vrot.lane.b32.xlu2 %v437_v35, %s1259_s13  ;;  %458 = vst [vmem:[#allocation1] ss:$2 sm:$0xff] %v1246_v8 }
  0x6f   : >> { %v488_v38 = vld.sshfl [vmem:[#allocation1 + $0x10] sm:$0xff pattern:$0x75316420] }
  0x70   : >> { %508 = vst [vmem:[#allocation1 + $0x10] ss:$2 sm:$0xff] %v503_v37 }
  0x71   : >> { %v461_v39 = vld.sshfl [vmem:[#allocation1] sm:$0xff pattern:$0x75316420]  ;;  %v462_v40 = vld.sshfl [vmem:[#allocation1 + $0x8] sm:$0xff pattern:$0x75316420] }
  0x72   : >> { %464 = vrot.lane.b32.xlu1 %v461_v39, %s1260_s14  ;;  %439 = vrot.lane.b32.xlu2 %v436_v36, %s1259_s13  ;;  %483 = vst [vmem:[#allocation1] ss:$2 sm:$0xff] %v1246_v8 }
  0x77   : >> { %v511_v41 = vld.sshfl [vmem:[#allocation1 + $0x10] sm:$0xff pattern:$0x75316420] }
  0x78   : >> { %516 = vrot.lane.b32.xlu0 %v511_v41, %s1261_s15 }
  0x79   : >> { %v487_v42 = vld.sshfl [vmem:[#allocation1 + $0x8] sm:$0xff pattern:$0x75316420]  ;;  %v486_v43 = vld.sshfl [vmem:[#allocation1] sm:$0xff pattern:$0x75316420] }
  0x7a   : >> { %491 = vrot.lane.b32.xlu1 %v487_v42, %s1262_s16  ;;  %493 = vrot.lane.b32.xlu2 %v488_v38, %s1262_s16  ;;  %506 = vst [vmem:[#allocation1] ss:$2 sm:$0xff] %v1246_v8 }
  0x81   : >> { %v510_v44 = vld.sshfl [vmem:[#allocation1 + $0x8] sm:$0xff pattern:$0x75316420]  ;;  %v509_v45 = vld.sshfl [vmem:[#allocation1] sm:$0xff pattern:$0x75316420] }
  0x82   : >> { %489 = vrot.lane.b32.xlu1 %v486_v43, %s1262_s16  ;;  %514 = vrot.lane.b32.xlu0 %v510_v44, %s1261_s15 }
  0x83   : >> { %466 = vrot.lane.b32.xlu2 %v462_v40, %s1260_s14  ;;  %v536_v40 = vld [vmem:[#allocation3 + $0x40] sm:$0xff] }
  0x8a   : >> { %512 = vrot.lane.b32.xlu1 %v509_v45, %s1261_s15  ;;  %359 = vrot.lane.b32.xlu0 %v1417_v20, %s1263_s17 }
  0x8b   : >> { %334 = vrot.lane.b32.xlu2 %v1411_v16, %s1264_s26 }
  0x92   : >> { %361 = vrot.lane.b32.xlu1 %v1413_v18, %s1263_s17  ;;  %336 = vrot.lane.b32.xlu0 %v1407_v14, %s1264_s26 }
  0x93   : >> { %332 = vrot.lane.b32.xlu2 %v1409_v15, %s1264_s26 }
  0x9a   : >> { %357 = vrot.lane.b32.xlu1 %v1415_v19, %s1263_s17  ;;  %547 = vperm.xlu0 %1102, %v320_v28   ;;  %v735_v28 = vld [vmem:[#allocation2 + $0xc] sm:$0xf] }
  0xac   : >> { %v383_v46 = vpop.permute.xlu2 %382 }
  0xb4   : >> { %v381_v47 = vpop.permute.xlu2 %380 }
  0xb5   : >> { %v387_v48 = vsel %vm386_vm4, %v381_v47, %v383_v46 }
  0xb6   : >> { %v391_v49 = vsel %vm1383_vm1, %v387_v48, 0.0 }
  0xb7   : >> { %393 = vst [vmem:[#allocation3 + $0x20] sm:$0xf] %v391_v49 }
  0xc2   : >> { %v385_v50 = vpop.permute.xlu0 %384 }
  0xc3   : >> { %v388_v51 = vsel %vm386_vm4, %v383_v46, %v385_v50 }
  0xc4   : >> { %v392_v52 = vsel %vm1391_vm3, %v388_v51, 0.0  ;;  %v442_v53 = vpop.permute.xlu2 %441  ;;  %v535_v51 = vld [vmem:[#allocation3 + $0x88] sm:$0xff] }
  0xc5   : >> { %394 = vst [vmem:[#allocation3 + $0x8] sm:$0xf] %v392_v52 }
  0xca   : >> { %v410_v54 = vpop.permute.xlu1 %409 }
  0xcc   : >> { %v408_v55 = vpop.permute.xlu0 %407  ;;  %v440_v56 = vpop.permute.xlu2 %439  ;;  %v532_v48 = vld [vmem:[#allocation3 + $0x8] sm:$0xff] }
  0xcd   : >> { %v413_v57 = vsel %vm411_vm5, %v408_v55, %v410_v54  ;;  %v446_v58 = vsel %vm445_vm6, %v440_v56, %v442_v53 }
  0xce   : >> { %v417_v59 = vsel %vm1387_vm2, %v413_v57, 0.0  ;;  %v450_v60 = vsel %vm1383_vm1, %v446_v58, 0.0  ;;  %v531_v57 = vld [vmem:[#allocation3 + $0x20] sm:$0xff] }
  0xcf   : >> { %419 = vst [vmem:[#allocation3 + $0x80] sm:$0xf] %v417_v59 }
  0xd0   : >> { %452 = vst [vmem:[#allocation3 + $0x50] sm:$0xf] %v450_v60 }
  0xd2   : >> { %v406_v61 = vpop.permute.xlu1 %405 }
  0xd3   : >> { %v412_v62 = vsel %vm411_vm5, %v406_v61, %v408_v55  ;;  %v318_v55 = vld [vmem:[%s317_s6] sm:$0xf] }
  0xd4   : >> { %v416_v63 = vsel %vm1379_vm0, %v412_v62, 0.0  ;;  %v444_v0 = vpop.permute.xlu0 %443  ;;  %v494_v1 = vpop.permute.xlu2 %493 }
  0xd5   : >> { %418 = vst [vmem:[#allocation3 + $0x70] sm:$0xf] %v416_v63  ;;  %v447_v2 = vsel %vm445_vm6, %v442_v53, %v444_v0 }
  0xd6   : >> { %v451_v3 = vsel %vm1391_vm3, %v447_v2, 0.0  ;;  %v534_v46 = vld [vmem:[#allocation3 + $0x80] sm:$0xff] }
  0xd7   : >> { %453 = vst [vmem:[#allocation3 + $0x28] sm:$0xf] %v451_v3  ;;  %v537_v50 = vld [vmem:[#allocation3 + $0x50] sm:$0xff] }
  0xdc   : >> { %v469_v4 = vpop.permute.xlu0 %468  ;;  %v533_v56 = vld [vmem:[#allocation3 + $0x70] sm:$0xff] }
  0xdd   : >> { %v467_v5 = vpop.permute.xlu2 %466 }
  0xde   : >> { %v472_v11 = vsel %vm470_vm7, %v467_v5, %v469_v4  ;;  %v538_v38 = vld [vmem:[#allocation3 + $0x28] sm:$0xff] }
  0xdf   : >> { %v476_v12 = vsel %vm1387_vm2, %v472_v11, 0.0 }
  0xe0   : >> { %478 = vst [vmem:[#allocation3 + $0x48] sm:$0xf] %v476_v12 }
  0xe4   : >> { %v465_v13 = vpop.permute.xlu1 %464 }
  0xe5   : >> { %v471_v14 = vsel %vm470_vm7, %v465_v13, %v467_v5  ;;  %v335_v15 = vpop.permute.xlu2 %334 }
  0xe6   : >> { %v475_v16 = vsel %vm1379_vm0, %v471_v14, 0.0 }
  0xe7   : >> { %477 = vst [vmem:[#allocation3 + $0x10] sm:$0xf] %v475_v16  ;;  %v540_v36 = vld [vmem:[#allocation3 + $0x48] sm:$0xff] }
  0xea   : >> { %v517_v17 = vpop.permute.xlu0 %516 }
  0xec   : >> { %v492_v18 = vpop.permute.xlu1 %491 }
  0xed   : >> { %v497_v19 = vsel %vm495_vm8, %v492_v18, %v494_v1  ;;  %v333_v20 = vpop.permute.xlu2 %332 }
  0xee   : >> { %501 = vst [vmem:[#allocation3 + $0x18] sm:$0xf] %v497_v19  ;;  %v339_v21 = vsel %vm338_vm9, %v333_v20, %v335_v15  ;;  %v539_v47 = vld [vmem:[#allocation3 + $0x10] sm:$0xff] }
  0xef   : >> { %v343_v22 = vsel %vm1379_vm0, %v339_v21, 0.0 }
  0xf0   : >> { %345 = vst [vmem:[#allocation3] sm:$0xf] %v343_v22 }
  0xf4   : >> { %v490_v23 = vpop.permute.xlu1 %489  ;;  %v515_v24 = vpop.permute.xlu0 %514 }
  0xf5   : >> { %v496_v25 = vsel %vm495_vm8, %v490_v23, %v492_v18  ;;  %v520_v26 = vsel %vm518_vm10, %v515_v24, %v517_v17  ;;  %v542_v35 = vld [vmem:[#allocation3 + $0x18] sm:$0xff] }
  0xf6   : >> { %500 = vst [vmem:[#allocation3 + $0x30] sm:$0xf] %v496_v25  ;;  %v524_v27 = vsel %vm1391_vm3, %v520_v26, 0.0 }
  0xf7   : >> { %526 = vst [vmem:[#allocation3 + $0x60] sm:$0xf] %v524_v27  ;;  %v527_v59 = vld [vmem:[#allocation3] sm:$0xff] }
  0xfc   : >> { %v513_v30 = vpop.permute.xlu1 %512  ;;  %v360_v31 = vpop.permute.xlu0 %359 }
  0xfd   : >> { %v519_v32 = vsel %vm518_vm10, %v513_v30, %v515_v24  ;;  %v541_v45 = vld [vmem:[#allocation3 + $0x30] sm:$0xff]  ;;  %v711_v24 = vld [vmem:[#allocation2 + $0xc] sm:$0xf] }
  0xfe   : >> { %v523_v33 = vsel %vm1383_vm1, %v519_v32, 0.0  ;;  %v544_v34 = vld [vmem:[#allocation3 + $0x60] sm:$0xff]  ;;  %v759_v32 = vld [vmem:[#allocation2 + $0xc] sm:$0xf] }
  0xff   : >> { %525 = vst [vmem:[#allocation3 + $0x68] sm:$0xf] %v523_v33  ;;  %581 = vmatpush.msra.mxu1 %v544_v34 }
 0x101   : >> { %582 = vmatpush.msra.mxu1 %v542_v35 }
 0x103   : >> { %583 = vmatpush.msra.mxu1 %v540_v36  ;;  %v781_v36 = vld [vmem:[#allocation2 + $0xc] sm:$0xf] }
 0x104   : >> { %v362_v37 = vpop.permute.xlu1 %361  ;;  %v337_v39 = vpop.permute.xlu0 %336 }
 0x105   : >> { %v365_v41 = vsel %vm363_vm11, %v360_v31, %v362_v37  ;;  %584 = vmatpush.msra.mxu1 %v538_v38  ;;  %v340_v42 = vsel %vm338_vm9, %v335_v15, %v337_v39 }
 0x106   : >> { %369 = vst [vmem:[#allocation3 + $0x58] sm:$0xf] %v365_v41  ;;  %v344_v43 = vsel %vm1387_vm2, %v340_v42, 0.0  ;;  %v543_v44 = vld [vmem:[#allocation3 + $0x68] sm:$0xff] }
 0x107   : >> { %346 = vst [vmem:[#allocation3 + $0x38] sm:$0xf] %v344_v43  ;;  %561 = vmatpush.msra.mxu0 %v543_v44  ;;  %585 = vmatpush.msra.mxu1 %v536_v40 }
 0x109   : >> { %562 = vmatpush.msra.mxu0 %v541_v45  ;;  %586 = vmatpush.msra.mxu1 %v534_v46 }
 0x10b   : >> { %563 = vmatpush.msra.mxu0 %v539_v47  ;;  %587 = vmatpush.msra.mxu1 %v532_v48 }
 0x10c   : >> { %v358_v49 = vpop.permute.xlu1 %357  ;;  %v548_v60 = vpop.permute.xlu0 %547 }
 0x10d   : >> { %v364_v52 = vsel %vm363_vm11, %v358_v49, %v360_v31  ;;  %564 = vmatpush.msra.mxu0 %v537_v50  ;;  %v530_v53 = vld [vmem:[#allocation3 + $0x58] sm:$0xff] }
 0x10e   : >> { %368 = vst [vmem:[#allocation3 + $0x78] sm:$0xf] %v364_v52  ;;  %588 = vmatpush.msra.mxu1 %v530_v53  ;;  %v528_v54 = vld [vmem:[#allocation3 + $0x38] sm:$0xff] }
 0x10f   : >> { %565 = vmatpush.msra.mxu0 %v535_v51 }
 0x110   : >> { %589 = vmatpush.msra.mxu1 %v528_v54 }
 0x111   : >> { %566 = vmatpush.msra.mxu0 %v533_v56  ;;  %1004 = vmatmul.msk.f32.vlgmr.msra.gmra.mxu1 %vm550_vm12, %v318_v55 }
 0x113   : >> { %567 = vmatpush.msra.mxu0 %v531_v57 }
 0x115   : >> { %v529_v58 = vld [vmem:[#allocation3 + $0x78] sm:$0xff] }
 0x116   : >> { %568 = vmatpush.msra.mxu0 %v529_v58 }
 0x118   : >> { %569 = vmatpush.msra.mxu0 %v527_v59 }
 0x119   : >> { %1003 = vmatmul.msk.f32.vlgmr.msra.gmra.mxu0 %vm550_vm12, %v318_v55 }
 0x18e   : >> { %v591_v61 = vpop.f32.mrf.mxu1 }
 0x18f   : >> { %v592_v62 = vadd.f32 %v591_v61, %v548_v60 }
 0x191   : >> { %v595_v63 = vmax.f32 %v592_v62, 0.0 }
 0x193   : >> { %v602_v1 = vrot.slane %v595_v63, 4 }
 0x196   : >> { %v571_v0 = vpop.f32.mrf.mxu0 }
 0x197   : >> { %v572_v2 = vadd.f32 %v571_v0, %v548_v60 }
 0x199   : >> { %v594_v3 = vmax.f32 %v572_v2, 0.0 }
 0x19b   : >> { %v1505_v4 = vsel %vm603_vm13, %v594_v3, %v602_v1 }
 0x19c   : >> { %606 = vst [vmem:[#allocation2 + $0x4] sm:$0xff] %v1505_v4 }
 0x1a3   : >> { %v607_v5 = vld [vmem:[#allocation2] sm:$0xff]  ;;  %v608_v11 = vld [vmem:[#allocation2 + $0x8] sm:$0xf] }
 0x1a4   : >> { %611 = vst [vmem:[#allocation1] ss:$2 sm:$0xff] %v607_v5  ;;  %v632_v12 = vld [vmem:[#allocation2 + $0x8] sm:$0xf] }
 0x1a5   : >> { %613 = vst [vmem:[#allocation1 + $0x10] ss:$2 sm:$0xff] %v608_v11  ;;  %v654_v16 = vld [vmem:[#allocation2 + $0x8] sm:$0xf] }
 0x1a6   : >> { %v678_v20 = vld [vmem:[#allocation2 + $0x8] sm:$0xf] }
 0x1ab   : >> { %v1508_v13 = vld.sshfl [vmem:[#allocation1] sm:$0xff pattern:$0x75316420]  ;;  %v1510_v14 = vld.sshfl [vmem:[#allocation1 + $0x8] sm:$0xff pattern:$0x75316420] }
 0x1ac   : >> { %v1512_v15 = vld.sshfl [vmem:[#allocation1 + $0x10] sm:$0xff pattern:$0x75316420]  ;;  %635 = vst [vmem:[#allocation1] ss:$2 sm:$0xff] %v607_v5 }
 0x1ad   : >> { %637 = vst [vmem:[#allocation1 + $0x10] ss:$2 sm:$0xff] %v632_v12 }
 0x1b3   : >> { %v1514_v17 = vld.sshfl [vmem:[#allocation1] sm:$0xff pattern:$0x75316420]  ;;  %v639_v18 = vld.sshfl [vmem:[#allocation1 + $0x8] sm:$0xff pattern:$0x75316420] }
 0x1b4   : >> { %v640_v19 = vld.sshfl [vmem:[#allocation1 + $0x10] sm:$0xff pattern:$0x75316420]  ;;  %657 = vst [vmem:[#allocation1] ss:$2 sm:$0xff] %v607_v5 }
 0x1b5   : >> { %659 = vst [vmem:[#allocation1 + $0x10] ss:$2 sm:$0xff] %v654_v16 }
 0x1bb   : >> { %v661_v21 = vld.sshfl [vmem:[#allocation1 + $0x8] sm:$0xff pattern:$0x75316420]  ;;  %v660_v22 = vld.sshfl [vmem:[#allocation1] sm:$0xff pattern:$0x75316420] }
 0x1bc   : >> { %v662_v23 = vld.sshfl [vmem:[#allocation1 + $0x10] sm:$0xff pattern:$0x75316420]  ;;  %665 = vrot.lane.b32.xlu1 %v661_v21, %s1257_s11  ;;  %681 = vst [vmem:[#allocation1] ss:$2 sm:$0xff] %v607_v5 }
 0x1bd   : >> { %667 = vrot.lane.b32.xlu2 %v662_v23, %s1257_s11  ;;  %683 = vst [vmem:[#allocation1 + $0x10] ss:$2 sm:$0xff] %v678_v20 }
 0x1c3   : >> { %v685_v25 = vld.sshfl [vmem:[#allocation1 + $0x8] sm:$0xff pattern:$0x75316420]  ;;  %v684_v26 = vld.sshfl [vmem:[#allocation1] sm:$0xff pattern:$0x75316420] }
 0x1c4   : >> { %v686_v27 = vld.sshfl [vmem:[#allocation1 + $0x10] sm:$0xff pattern:$0x75316420]  ;;  %663 = vrot.lane.b32.xlu1 %v660_v22, %s1257_s11  ;;  %703 = vst [vmem:[#allocation1] ss:$2 sm:$0xff] %v1505_v4 }
 0x1c5   : >> { %691 = vrot.lane.b32.xlu0 %v686_v27, %s1258_s12  ;;  %689 = vrot.lane.b32.xlu2 %v685_v25, %s1258_s12  ;;  %716 = vst [vmem:[#allocation1 + $0x10] ss:$2 sm:$0xff] %v711_v24 }
 0x1cb   : >> { %v704_v29 = vld.sshfl [vmem:[#allocation1] sm:$0xff pattern:$0x75316420]  ;;  %v705_v30 = vld.sshfl [vmem:[#allocation1 + $0x8] sm:$0xff pattern:$0x75316420] }
 0x1cc   : >> { %708 = vst [vmem:[#allocation3 + $0x88] sm:$0xf] %v704_v29  ;;  %v719_v31 = vld.sshfl [vmem:[#allocation1 + $0x10] sm:$0xff pattern:$0x75316420] }
 0x1cd   : >> { %687 = vrot.lane.b32.xlu0 %v684_v26, %s1258_s12  ;;  %709 = vst [vmem:[#allocation3 + $0x40] sm:$0xf] %v705_v30  ;;  %724 = vrot.lane.b32.xlu2 %v719_v31, %s1259_s13  ;;  %s1184_s12 = scalar_lea.hbm (%p311_p0), %s1645_s5, 16 }
 0x1ce   : >> { %714 = vst [vmem:[#allocation1] ss:$2 sm:$0xff] %v1505_v4 }
 0x1cf   : >> { %740 = vst [vmem:[#allocation1 + $0x10] ss:$2 sm:$0xff] %v735_v28 }
 0x1d5   : >> { %v718_v33 = vld.sshfl [vmem:[#allocation1 + $0x8] sm:$0xff pattern:$0x75316420]  ;;  %v717_v34 = vld.sshfl [vmem:[#allocation1] sm:$0xff pattern:$0x75316420] }
 0x1d6   : >> { %722 = vrot.lane.b32.xlu1 %v718_v33, %s1259_s13  ;;  %v743_v35 = vld.sshfl [vmem:[#allocation1 + $0x10] sm:$0xff pattern:$0x75316420]  ;;  %738 = vst [vmem:[#allocation1] ss:$2 sm:$0xff] %v1505_v4 }
 0x1d7   : >> { %748 = vrot.lane.b32.xlu2 %v743_v35, %s1260_s14  ;;  %764 = vst [vmem:[#allocation1 + $0x10] ss:$2 sm:$0xff] %v759_v32 }
 0x1dd   : >> { %v742_v37 = vld.sshfl [vmem:[#allocation1 + $0x8] sm:$0xff pattern:$0x75316420]  ;;  %v741_v38 = vld.sshfl [vmem:[#allocation1] sm:$0xff pattern:$0x75316420] }
 0x1de   : >> { %v767_v39 = vld.sshfl [vmem:[#allocation1 + $0x10] sm:$0xff pattern:$0x75316420]  ;;  %720 = vrot.lane.b32.xlu1 %v717_v34, %s1259_s13  ;;  %762 = vst [vmem:[#allocation1] ss:$2 sm:$0xff] %v1505_v4  ;;  %s598_s13 = scalar_lea.vmem %s1644_s4, %s1485_s30 }
 0x1df   : >> { %772 = vrot.lane.b32.xlu0 %v767_v39, %s1262_s16  ;;  %786 = vst [vmem:[#allocation1 + $0x10] ss:$2 sm:$0xff] %v781_v36  ;;  %v599_v23 = vld [vmem:[%s598_s13] sm:$0xf] }
 0x1e5   : >> { %v766_v40 = vld.sshfl [vmem:[#allocation1 + $0x8] sm:$0xff pattern:$0x75316420]  ;;  %v765_v41 = vld.sshfl [vmem:[#allocation1] sm:$0xff pattern:$0x75316420] }
 0x1e6   : >> { %v789_v42 = vld.sshfl [vmem:[#allocation1 + $0x10] sm:$0xff pattern:$0x75316420]  ;;  %746 = vrot.lane.b32.xlu1 %v742_v37, %s1260_s14  ;;  %784 = vst [vmem:[#allocation1] ss:$2 sm:$0xff] %v1505_v4 }
 0x1e7   : >> { %794 = vrot.lane.b32.xlu2 %v789_v42, %s1261_s15  ;;  %744 = vrot.lane.b32.xlu0 %v741_v38, %s1260_s14  ;;  %s596_s14 = scalar_lea.vmem [#allocation7], %s1485_s30  ;;  %s891_s30 = sshll.u32 (%p311_p0), %s251_s9, 4  ;;  %s892_s30 = int_to_ptr.vmem [resolvable:$true] %s891_s30 }
 0x1ed   : >> { %v788_v43 = vld.sshfl [vmem:[#allocation1 + $0x8] sm:$0xff pattern:$0x75316420]  ;;  %v787_v44 = vld.sshfl [vmem:[#allocation1] sm:$0xff pattern:$0x75316420] }
 0x1ee   : >> { %792 = vrot.lane.b32.xlu1 %v788_v43, %s1261_s15 }
 0x1ef   : >> { %770 = vrot.lane.b32.xlu2 %v766_v40, %s1262_s16  ;;  %768 = vrot.lane.b32.xlu0 %v765_v41, %s1262_s16  ;;  %v813_v41 = vld [vmem:[#allocation3 + $0x40] sm:$0xff] }
 0x1f6   : >> { %790 = vrot.lane.b32.xlu1 %v787_v44, %s1261_s15  ;;  %s1013_s15 = sshll.u32 (%p311_p0), %s1317_s22, 3 }
 0x1f7   : >> { %643 = vrot.lane.b32.xlu2 %v639_v18, %s1263_s17  ;;  %645 = vrot.lane.b32.xlu0 %v640_v19, %s1263_s17 }
 0x1fe   : >> { %619 = vrot.lane.b32.xlu1 %v1510_v14, %s1264_s26 }
 0x1ff   : >> { %621 = vrot.lane.b32.xlu2 %v1512_v15, %s1264_s26  ;;  %641 = vrot.lane.b32.xlu0 %v1514_v17, %s1263_s17 }
 0x206   : >> { %617 = vrot.lane.b32.xlu1 %v1508_v13, %s1264_s26  ;;  %s889_s26 = scalar_lea.hbm (%p311_p0), %s1645_s5, %s1013_s15 }
 0x207   : >> { %824 = vperm.xlu2 %1103, %v599_v23   ;;  %s893_s7 = sshll.u32 (%p311_p0), %s889_s26, 4  ;;  %s894_s7 = int_to_ptr.hbm [resolvable:$true] %s893_s7 }
 0x208   : > { %s1178_s8 = sshra.s32 (%p311_p0), %s894_s7, 4  ;;  %s1179_s8 = int_to_ptr.hbm [resolvable:$true] %s1178_s8 }
 0x209   : > { %s1180_s6 = scalar_lea.hbm (%p311_p0), %s1179_s8, 8  ;;  %p1185_p4 = scmp.lt.s32.totalorder (%p311_p0), %s1179_s8, %s1645_s5 }
 0x20a   : > { %p1181_p1 = scmp.ne.s32.totalorder (%p311_p0), %s1179_s8, %s1180_s6  ;;  %p1186_p7 = scmp.lt.s32.totalorder (%p311_p0), %s1184_s12, %s1180_s6 }
 0x20c   : > { %p1182_p2 = pnand (%p311_p0), %p1181_p1, %p1334_p5  ;;  %p1187_p8 = por (%p311_p0), %p1186_p7, %p1185_p4 }
 0x20e   : > { %p1183_p3 = pneg (%p311_p0), %p1182_p2 }
 0x210   : > { %p1188_p9 = pnand (%p311_p0), %p1187_p8, %p1183_p3 }
 0x217   : >> { %v668_v45 = vpop.permute.xlu2 %667 }
 0x21f   : >> { %v690_v46 = vpop.permute.xlu2 %689 }
 0x227   : >> { %v725_v50 = vpop.permute.xlu2 %724 }
 0x22e   : >> { %v666_v47 = vpop.permute.xlu1 %665 }
 0x22f   : >> { %v670_v48 = vsel %vm386_vm4, %v666_v47, %v668_v45 }
 0x230   : >> { %v674_v49 = vsel %vm1391_vm3, %v670_v48, 0.0 }
 0x231   : >> { %676 = vst [vmem:[#allocation3 + $0x8] sm:$0xf] %v674_v49  ;;  %v749_v57 = vpop.permute.xlu2 %748 }
 0x236   : >> { %v664_v51 = vpop.permute.xlu1 %663 }
 0x237   : >> { %v692_v52 = vpop.permute.xlu0 %691  ;;  %v669_v53 = vsel %vm386_vm4, %v664_v51, %v666_v47  ;;  %v597_v51 = vld [vmem:[%s596_s14] sm:$0xf] }
 0x238   : >> { %v694_v54 = vsel %vm411_vm5, %v690_v46, %v692_v52  ;;  %v673_v55 = vsel %vm1383_vm1, %v669_v53, 0.0  ;;  %v809_v45 = vld [vmem:[#allocation3 + $0x8] sm:$0xff] }
 0x239   : >> { %v698_v56 = vsel %vm1387_vm2, %v694_v54, 0.0  ;;  %675 = vst [vmem:[#allocation3 + $0x20] sm:$0xf] %v673_v55  ;;  %v812_v52 = vld [vmem:[#allocation3 + $0x88] sm:$0xff] }
 0x23a   : >> { %700 = vst [vmem:[#allocation3 + $0x80] sm:$0xf] %v698_v56 }
 0x23f   : >> { %v688_v58 = vpop.permute.xlu0 %687 }
 0x240   : >> { %v693_v59 = vsel %vm411_vm5, %v688_v58, %v690_v46  ;;  %v808_v55 = vld [vmem:[#allocation3 + $0x20] sm:$0xff] }
 0x241   : >> { %v697_v60 = vsel %vm1379_vm0, %v693_v59, 0.0  ;;  %v795_v61 = vpop.permute.xlu2 %794  ;;  %v811_v43 = vld [vmem:[#allocation3 + $0x80] sm:$0xff] }
 0x242   : >> { %699 = vst [vmem:[#allocation3 + $0x70] sm:$0xf] %v697_v60 }
 0x248   : >> { %v723_v62 = vpop.permute.xlu1 %722 }
 0x249   : >> { %v727_v63 = vsel %vm445_vm6, %v723_v62, %v725_v50  ;;  %v771_v2 = vpop.permute.xlu2 %770  ;;  %v810_v54 = vld [vmem:[#allocation3 + $0x70] sm:$0xff] }
 0x24a   : >> { %v731_v0 = vsel %vm1391_vm3, %v727_v63, 0.0 }
 0x24b   : >> { %733 = vst [vmem:[#allocation3 + $0x28] sm:$0xf] %v731_v0 }
 0x250   : >> { %v721_v1 = vpop.permute.xlu1 %720 }
 0x251   : >> { %v773_v3 = vpop.permute.xlu0 %772  ;;  %v726_v4 = vsel %vm445_vm6, %v721_v1, %v723_v62  ;;  %v644_v24 = vpop.permute.xlu2 %643 }
 0x252   : >> { %v775_v5 = vsel %vm495_vm8, %v771_v2, %v773_v3  ;;  %v730_v11 = vsel %vm1383_vm1, %v726_v4, 0.0  ;;  %v815_v37 = vld [vmem:[#allocation3 + $0x28] sm:$0xff] }
 0x253   : >> { %779 = vst [vmem:[#allocation3 + $0x18] sm:$0xf] %v775_v5 }
 0x254   : >> { %732 = vst [vmem:[#allocation3 + $0x50] sm:$0xf] %v730_v11 }
 0x258   : >> { %v747_v12 = vpop.permute.xlu1 %746 }
 0x259   : >> { %v751_v13 = vsel %vm470_vm7, %v747_v12, %v749_v57  ;;  %v745_v14 = vpop.permute.xlu0 %744  ;;  %v622_v33 = vpop.permute.xlu2 %621 }
 0x25a   : >> { %v755_v15 = vsel %vm1387_vm2, %v751_v13, 0.0  ;;  %v750_v16 = vsel %vm470_vm7, %v745_v14, %v747_v12  ;;  %v819_v31 = vld [vmem:[#allocation3 + $0x18] sm:$0xff] }
 0x25b   : >> { %757 = vst [vmem:[#allocation3 + $0x48] sm:$0xf] %v755_v15  ;;  %v754_v17 = vsel %vm1379_vm0, %v750_v16, 0.0  ;;  %v814_v48 = vld [vmem:[#allocation3 + $0x50] sm:$0xff] }
 0x25c   : >> { %756 = vst [vmem:[#allocation3 + $0x10] sm:$0xf] %v754_v17 }
 0x260   : >> { %v793_v18 = vpop.permute.xlu1 %792 }
 0x261   : >> { %v769_v19 = vpop.permute.xlu0 %768  ;;  %v797_v20 = vsel %vm518_vm10, %v793_v18, %v795_v61  ;;  %v825_v58 = vpop.permute.xlu2 %824 }
 0x262   : >> { %v774_v21 = vsel %vm495_vm8, %v769_v19, %v771_v2  ;;  %v801_v22 = vsel %vm1391_vm3, %v797_v20, 0.0  ;;  %v817_v32 = vld [vmem:[#allocation3 + $0x48] sm:$0xff] }
 0x263   : >> { %778 = vst [vmem:[#allocation3 + $0x30] sm:$0xf] %v774_v21  ;;  %v816_v44 = vld [vmem:[#allocation3 + $0x10] sm:$0xff] }
 0x264   : >> { %803 = vst [vmem:[#allocation3 + $0x60] sm:$0xf] %v801_v22 }
 0x268   : >> { %v791_v25 = vpop.permute.xlu1 %790 }
 0x269   : >> { %v646_v26 = vpop.permute.xlu0 %645  ;;  %v796_v27 = vsel %vm518_vm10, %v791_v25, %v793_v18 }
 0x26a   : >> { %v648_v28 = vsel %vm363_vm11, %v644_v24, %v646_v26  ;;  %v800_v29 = vsel %vm1383_vm1, %v796_v27, 0.0  ;;  %v818_v42 = vld [vmem:[#allocation3 + $0x30] sm:$0xff] }
 0x26b   : >> { %652 = vst [vmem:[#allocation3 + $0x58] sm:$0xf] %v648_v28  ;;  %v821_v30 = vld [vmem:[#allocation3 + $0x60] sm:$0xff] }
 0x26c   : >> { %802 = vst [vmem:[#allocation3 + $0x68] sm:$0xf] %v800_v29  ;;  %857 = vmatpush.msra.mxu3 %v821_v30 }
 0x26e   : >> { %858 = vmatpush.msra.mxu3 %v819_v31 }
 0x270   : >> { %859 = vmatpush.msra.mxu3 %v817_v32  ;;  %v620_v34 = vpop.permute.xlu1 %619 }
 0x271   : >> { %v642_v35 = vpop.permute.xlu0 %641  ;;  %v624_v36 = vsel %vm338_vm9, %v620_v34, %v622_v33 }
 0x272   : >> { %v647_v38 = vsel %vm363_vm11, %v642_v35, %v644_v24  ;;  %v628_v39 = vsel %vm1387_vm2, %v624_v36, 0.0  ;;  %860 = vmatpush.msra.mxu3 %v815_v37  ;;  %v807_v49 = vld [vmem:[#allocation3 + $0x58] sm:$0xff] }
 0x273   : >> { %651 = vst [vmem:[#allocation3 + $0x78] sm:$0xf] %v647_v38  ;;  %v820_v40 = vld [vmem:[#allocation3 + $0x68] sm:$0xff] }
 0x274   : >> { %630 = vst [vmem:[#allocation3 + $0x38] sm:$0xf] %v628_v39  ;;  %837 = vmatpush.msra.mxu2 %v820_v40  ;;  %861 = vmatpush.msra.mxu3 %v813_v41 }
 0x276   : >> { %838 = vmatpush.msra.mxu2 %v818_v42  ;;  %862 = vmatpush.msra.mxu3 %v811_v43 }
 0x278   : >> { %839 = vmatpush.msra.mxu2 %v816_v44  ;;  %863 = vmatpush.msra.mxu3 %v809_v45  ;;  %v618_v46 = vpop.permute.xlu1 %617 }
 0x279   : >> { %v623_v47 = vsel %vm338_vm9, %v618_v46, %v620_v34 }
 0x27a   : >> { %v627_v50 = vsel %vm1379_vm0, %v623_v47, 0.0  ;;  %840 = vmatpush.msra.mxu2 %v814_v48  ;;  %864 = vmatpush.msra.mxu3 %v807_v49  ;;  %v806_v56 = vld [vmem:[#allocation3 + $0x78] sm:$0xff] }
 0x27b   : >> { %629 = vst [vmem:[#allocation3] sm:$0xf] %v627_v50  ;;  %v805_v53 = vld [vmem:[#allocation3 + $0x38] sm:$0xff] }
 0x27c   : >> { %841 = vmatpush.msra.mxu2 %v812_v52  ;;  %865 = vmatpush.msra.mxu3 %v805_v53 }
 0x27d   : >> { %1006 = vmatmul.msk.f32.vlgmr.msra.gmra.mxu3 %vm550_vm12, %v597_v51 }
 0x27e   : >> { %842 = vmatpush.msra.mxu2 %v810_v54 }
 0x280   : >> { %843 = vmatpush.msra.mxu2 %v808_v55 }
 0x282   : >> { %844 = vmatpush.msra.mxu2 %v806_v56  ;;  %v804_v57 = vld [vmem:[#allocation3] sm:$0xff] }
 0x284   : >> { %845 = vmatpush.msra.mxu2 %v804_v57 }
 0x285   : >> { %1005 = vmatmul.msk.f32.vlgmr.msra.gmra.mxu2 %vm550_vm12, %v597_v51 }
 0x300   : >> { %v867_v59 = vpop.f32.mrf.mxu3 }
 0x301   : >> { %v868_v60 = vadd.f32 %v867_v59, %v825_v58 }
 0x303   : >> { %v872_v61 = vrot.slane %v868_v60, 4 }
 0x308   : >> { %v847_v62 = vpop.f32.mrf.mxu2 }
 0x309   : >> { %v848_v63 = vadd.f32 %v847_v62, %v825_v58 }
 0x30a   : > { %313 = sbr.rel (!%p311_p0) target bundleno = 48 (0x30), region = 111 }
 0x30b   : >> { %v873_v0 = vsel %vm603_vm13, %v848_v63, %v872_v61 }
 0x30c   : >> { %v875_v1 = vadd.f32 %v1246_v8, %v873_v0  }
 0x30e   : >> { %v1657_v8 = vmov %v875_v1  ;;  %876 = vst [vmem:[%s251_s9] sm:$0xff] (%p311_p0), %v875_v1 }
 0x30f   : > { %1191 = shalt.err (!%p1188_p9)
}
 0x310   : > { %1022 = dma.vmem_to_hbm [thread:$0]  (%p1334_p5), %s892_s30, 128, %s894_s7, %s878_s10  }
 0x311 PF: > { %p1039_p10 = scmp.ge.s32.totalorder %s1242_s21, 2  ;;  %s905_s23 = sand.u32 1, %s1230_s18  }
 0x312   : > { %s906_s25 = scalar_lea.sflag [#allocation6], %s905_s23 }
 0x313   : > { %p1032_p11 = pnand %p1039_p10, %p1338_p6 }
 0x315   : > { %p1033_p12 = pneg %p1032_p11 }
 0x317   : > { %1225 = dma.done.wait (%p1033_p12), %s906_s25, 128  }
 0x318   : > { %1227 = vsyncadd (%p1033_p12), %s906_s25, 4294967168  ;;  %p17_p13 = scmp.ge.s32.totalorder %s1321_s24, 4   ;;  %s1658_s18 = smov %s1234_s19 }
 0x319   : > { %s1659_s19 = smov %s1238_s20  ;;  %s1660_s20 = smov %s1332_s27 }
 0x31a   : > { %s1661_s21 = smov %s1321_s24  ;;  %19 = sbr.rel (!%p17_p13) target bundleno = 5 (0x5), region = 122 }
 0x31f   :  { %912 = vsyncpa [#allocation5], 1 }
 0x320   :  { %914 = vsyncpa [#allocation5 + $0x1], 1 }
 0x321   :  { %915 = vsyncpa [#allocation8], 1 }
 0x322   :  { %916 = vsyncpa [#allocation6], 1 }
 0x323   :  { %918 = vsyncpa [#allocation6 + $0x1], 1 }

</bundles_post_ra>
